<compile_context>
chip_gen: v5e
topology: v5e:2x2
jax: 0.10.0
libtpu: 0.0.40
codegen_flags: <defaults>
</compile_context>

<pallas_src>
import functools

import jax
import jax.numpy as jnp
from jax import lax
from jax.experimental import pallas as pl
from jax.experimental.pallas import tpu as pltpu


# ----------------------------- Pallas kernels --------------------------------

def _accumulate(x_ref, w_ref, acc_ref, *, rem_k, compute_dtype):
    """acc += x_tile @ w_tile with masking of a ragged final K block."""
    k = pl.program_id(2)
    nk = pl.num_programs(2)
    x = x_ref[...].astype(compute_dtype)
    w = w_ref[...]
    if rem_k:
        # Final K block is ragged: zero the out-of-range K slice of BOTH operands
        # so undefined padded data (possibly NaN) cannot reach valid outputs.
        not_last = k != nk - 1
        kcol = lax.broadcasted_iota(jnp.int32, x.shape, 1)
        krow = lax.broadcasted_iota(jnp.int32, w.shape, 0)
        x = jnp.where(not_last | (kcol < rem_k), x, jnp.zeros_like(x))
        w = jnp.where(not_last | (krow < rem_k), w, jnp.zeros_like(w))
    acc_ref[...] += jnp.dot(x, w, preferred_element_type=jnp.float32)


def _linear_bias_kernel(x_ref, w_ref, b_ref, o_ref, acc_ref, *,
                        rem_k, compute_dtype):
    k = pl.program_id(2)

    @pl.when(k == 0)
    def _():
        # Fold the bias into the accumulator init (once per (i, j) tile).
        acc_ref[...] = jnp.broadcast_to(
            b_ref[...].astype(jnp.float32), acc_ref.shape)

    _accumulate(x_ref, w_ref, acc_ref, rem_k=rem_k, compute_dtype=compute_dtype)

    @pl.when(k == pl.num_programs(2) - 1)
    def _():
        o_ref[...] = acc_ref[...].astype(o_ref.dtype)


def _linear_kernel(x_ref, w_ref, o_ref, acc_ref, *, rem_k, compute_dtype):
    k = pl.program_id(2)

    @pl.when(k == 0)
    def _():
        acc_ref[...] = jnp.zeros_like(acc_ref)

    _accumulate(x_ref, w_ref, acc_ref, rem_k=rem_k, compute_dtype=compute_dtype)

    @pl.when(k == pl.num_programs(2) - 1)
    def _():
        o_ref[...] = acc_ref[...].astype(o_ref.dtype)


# ------------------------------ host wrapper ----------------------------------

def pallas_linear(x2d, weight, bias=None, *, tm=256, tn=256, tk=512,
                  compute_dtype=jnp.bfloat16):
    """x2d: (M, K); weight: (K, N); bias: (N,) or None -> (M, N) in x2d.dtype."""
    M, K = x2d.shape
    Kw, N = weight.shape
    assert K == Kw

    # Clamp tiles to the array extents (a full-extent block is always legal).
    tm = M if M < tm else tm
    tn = N if N < tn else tn
    tk = K if K < tk else tk
    # (8, 128) constraint applies only when the tile is smaller than the dim.
    assert tm == M or tm % 8 == 0
    assert tn == N or tn % 128 == 0
    assert tk == K or tk % 128 == 0

    grid = (pl.cdiv(M, tm), pl.cdiv(N, tn), pl.cdiv(K, tk))
    rem_k = K % tk  # 0 when tk divides K (or tk == K)

    # Weight streamed in the (narrow) compute dtype; x cast per-tile in-kernel.
    weight = weight.astype(compute_dtype)

    x_bytes = jnp.dtype(x2d.dtype).itemsize
    w_bytes = jnp.dtype(compute_dtype).itemsize
    o_bytes = jnp.dtype(x2d.dtype).itemsize
    vmem_est = (2 * (tm * tk * x_bytes + tk * tn * w_bytes + tm * tn * o_bytes)
                + tm * tn * 4 + 2 * tn * 4)
    vmem_limit = int(min(max(2 * vmem_est, 32 * 1024 * 1024), 64 * 1024 * 1024))

    compiler_params = pltpu.CompilerParams(
        dimension_semantics=("parallel", "parallel", "arbitrary"),
        vmem_limit_bytes=vmem_limit,
    )

    x_spec = pl.BlockSpec((tm, tk), lambda i, j, k: (i, k))
    w_spec = pl.BlockSpec((tk, tn), lambda i, j, k: (k, j))
    o_spec = pl.BlockSpec((tm, tn), lambda i, j, k: (i, j))
    scratch = [pltpu.VMEM((tm, tn), jnp.float32)]
    out_shape = jax.ShapeDtypeStruct((M, N), x2d.dtype)

    if bias is not None:
        b_spec = pl.BlockSpec((1, tn), lambda i, j, k: (0, j))
        kernel = functools.partial(_linear_bias_kernel, rem_k=rem_k,
                                   compute_dtype=compute_dtype)
        return pl.pallas_call(
            kernel,
            out_shape=out_shape,
            grid_spec=pltpu.PrefetchScalarGridSpec(
                num_scalar_prefetch=0, grid=grid,
                in_specs=[x_spec, w_spec, b_spec],
                out_specs=o_spec,
                scratch_shapes=scratch),
            compiler_params=compiler_params,
        )(x2d, weight, bias.reshape(1, N))
    else:
        kernel = functools.partial(_linear_kernel, rem_k=rem_k,
                                   compute_dtype=compute_dtype)
        return pl.pallas_call(
            kernel,
            out_shape=out_shape,
            grid_spec=pltpu.PrefetchScalarGridSpec(
                num_scalar_prefetch=0, grid=grid,
                in_specs=[x_spec, w_spec],
                out_specs=o_spec,
                scratch_shapes=scratch),
            compiler_params=compiler_params,
        )(x2d, weight)


# --------------------------- CustomLinear module -----------------------------

class CustomLinearPallas:
    """JAX/Pallas port of the PyTorch CustomLinear (VQ linear) module."""

    def __init__(self, in_features, out_features, num_clusters, cluster_dim,
                 bias=True, *, key, dtype=jnp.float32,
                 compute_dtype=jnp.bfloat16):
        self.in_features = in_features
        self.out_features = out_features
        self.num_clusters = num_clusters
        self.cluster_dim = cluster_dim
        self.compute_dtype = compute_dtype
        self.deficiency = out_features % cluster_dim
        if self.deficiency > 0:
            self.deficiency = cluster_dim - self.deficiency
        index_length = in_features * (out_features + self.deficiency) // cluster_dim

        k1, k2, k3 = jax.random.split(key, 3)
        # Deterministic synthetic parameters (the PyTorch module leaves them
        # uninitialized / loaded from a checkpoint).
        self.cluster = jax.random.normal(k1, (num_clusters, cluster_dim), dtype=dtype)
        self.index = jax.random.randint(k2, (index_length,), 0, num_clusters,
                                        dtype=jnp.int32)
        if bias:
            self.bias = jax.random.normal(k3, (out_features,), dtype=dtype)
        else:
            self.bias = None

    def _materialize_weight(self):
        # Glue: gather codebook vectors, reshape, trim the padded columns.
        vectors = self.cluster[self.index]                      # (index_length, cluster_dim)
        weight = vectors.reshape(self.in_features, -1)          # (in, out + deficiency)
        if self.deficiency > 0:
            weight = weight[:, :-self.deficiency]               # (in, out)
        return weight

    def __call__(self, x):
        weight = self._materialize_weight()
        lead = x.shape[:-1]
        x2d = x.reshape(-1, self.in_features)
        out2d = pallas_linear(x2d, weight, self.bias,
                              compute_dtype=self.compute_dtype)
        return out2d.reshape(*lead, self.out_features)


# ---------------------------------- main -------------------------------------

if __name__ == "__main__":
    key = jax.random.PRNGKey(0)
    k1, k2, k3, k4 = jax.random.split(key, 4)

    # --- Test 1: small shapes, deficiency path exercised, f32 compute ---------
    batch, seq = 2, 8
    in_f, out_f = 32, 24                     # 24 % 16 != 0 -> deficiency path
    mod1 = CustomLinearPallas(in_f, out_f, num_clusters=4, cluster_dim=16,
                              bias=True, key=k1, compute_dtype=jnp.float32)
    x1 = jax.random.normal(k2, (batch, seq, in_f), dtype=jnp.float32)
    out1 = jax.block_until_ready(mod1(x1))

    w1 = mod1._materialize_weight()
    ref1 = jnp.matmul(x1, w1) + mod1.bias
    assert out1.shape == (batch, seq, out_f)
    assert jnp.allclose(out1, ref1, atol=1e-4, rtol=1e-4), "f32 path mismatch"

    # --- Test 2: multi-tile grid (ragged M/N/K blocks), bf16 MXU path ---------
    in_f2, out_f2 = 640, 384                 # tk=512 -> ragged K; tn=256 -> ragged N
    mod2 = CustomLinearPallas(in_f2, out_f2, num_clusters=16, cluster_dim=16,
                              bias=True, key=k3, compute_dtype=jnp.bfloat16)
    x2 = jax.random.normal(k4, (2, 300, in_f2), dtype=jnp.float32)  # M=600 ragged
    out2 = jax.block_until_ready(mod2(x2))

    w2 = mod2._materialize_weight()
    x2d = x2.reshape(-1, in_f2)
    ref2 = (jnp.dot(x2d.astype(jnp.bfloat16), w2.astype(jnp.bfloat16),
                    preferred_element_type=jnp.float32)
            + mod2.bias).reshape(2, 300, out_f2)
    assert out2.shape == (2, 300, out_f2)
    assert bool(jnp.isfinite(out2).all())
    assert jnp.allclose(out2, ref2, atol=1e-2, rtol=1e-2), "bf16 path mismatch"

    print("KERNEL_OK")
</pallas_src>

<mosaic_0001>
module attributes {stable_mosaic.version = 11 : i64} {
  func.func @_linear_bias_kernel(%arg0: i32, %arg1: i32, %arg2: i32, %arg3: memref<16x32xf32, #tpu.memory_space<vmem>>, %arg4: memref<32x24xf32, #tpu.memory_space<vmem>>, %arg5: memref<1x24xf32, #tpu.memory_space<vmem>>, %arg6: memref<16x24xf32, #tpu.memory_space<vmem>>, %arg7: memref<16x24xf32, #tpu.memory_space<vmem>>) attributes {dimension_semantics = [#tpu.dimension_semantics<parallel>, #tpu.dimension_semantics<parallel>, #tpu.dimension_semantics<arbitrary>], iteration_bounds = array<i64: 1, 1, 1>, scalar_prefetch = 0 : i64, scratch_operands = 1 : i64, tpu.core_type = #tpu.core_type<tc>, window_params = [{transform_indices = @transform_0, window_bounds = array<i64: 16, 32>}, {transform_indices = @transform_1, window_bounds = array<i64: 32, 24>}, {transform_indices = @transform_2, window_bounds = array<i64: 1, 24>}, {transform_indices = @transform_3, window_bounds = array<i64: 16, 24>}]} {
    %c0_i32 = arith.constant 0 : i32
    %0 = arith.cmpi eq, %arg2, %c0_i32 : i32
    %1 = arith.extui %0 : i1 to i32
    %c0_i32_0 = arith.constant 0 : i32
    %2 = arith.cmpi ne, %1, %c0_i32_0 : i32
    scf.if %2 {
      %c0_10 = arith.constant 0 : index
      %c0_11 = arith.constant 0 : index
      %12 = vector.load %arg5[%c0_10, %c0_11] : memref<1x24xf32, #tpu.memory_space<vmem>>, vector<1x24xf32>
      %13 = vector.shape_cast %12 : vector<1x24xf32> to vector<1x24xf32>
      %14 = vector.broadcast %13 : vector<1x24xf32> to vector<16x24xf32>
      %c0_12 = arith.constant 0 : index
      %c0_13 = arith.constant 0 : index
      %15 = vector.load %arg7[%c0_12, %c0_13] : memref<16x24xf32, #tpu.memory_space<vmem>>, vector<16x24xf32>
      tpu.vector_store %arg7[%c0_12, %c0_13], %14 {strides = array<i32>} : memref<16x24xf32, #tpu.memory_space<vmem>>, vector<16x24xf32>,
    } else {
    }
    %c0 = arith.constant 0 : index
    %c0_1 = arith.constant 0 : index
    %3 = vector.load %arg3[%c0, %c0_1] : memref<16x32xf32, #tpu.memory_space<vmem>>, vector<16x32xf32>
    %c0_2 = arith.constant 0 : index
    %c0_3 = arith.constant 0 : index
    %4 = vector.load %arg4[%c0_2, %c0_3] : memref<32x24xf32, #tpu.memory_space<vmem>>, vector<32x24xf32>
    %c0_4 = arith.constant 0 : index
    %c0_5 = arith.constant 0 : index
    %5 = vector.load %arg7[%c0_4, %c0_5] : memref<16x24xf32, #tpu.memory_space<vmem>>, vector<16x24xf32>
    %cst = arith.constant dense<0.000000e+00> : vector<16x24xf32>
    %6 = tpu.matmul %3, %4, %cst {dimension_numbers = #tpu.dot_dimension_numbers<[1], [0], [0], [1], [0, 0, 1, 1], [], []>} : vector<16x32xf32>, vector<32x24xf32>, vector<16x24xf32> -> vector<16x24xf32>
    %7 = arith.addf %5, %6 : vector<16x24xf32>
    %c0_6 = arith.constant 0 : index
    %c0_7 = arith.constant 0 : index
    %8 = vector.load %arg7[%c0_6, %c0_7] : memref<16x24xf32, #tpu.memory_space<vmem>>, vector<16x24xf32>
    tpu.vector_store %arg7[%c0_6, %c0_7], %7 {strides = array<i32>} : memref<16x24xf32, #tpu.memory_space<vmem>>, vector<16x24xf32>,
    %c0_i32_8 = arith.constant 0 : i32
    %9 = arith.cmpi eq, %arg2, %c0_i32_8 : i32
    %10 = arith.extui %9 : i1 to i32
    %c0_i32_9 = arith.constant 0 : i32
    %11 = arith.cmpi ne, %10, %c0_i32_9 : i32
    scf.if %11 {
      %c0_10 = arith.constant 0 : index
      %c0_11 = arith.constant 0 : index
      %12 = vector.load %arg7[%c0_10, %c0_11] : memref<16x24xf32, #tpu.memory_space<vmem>>, vector<16x24xf32>
      %c0_12 = arith.constant 0 : index
      %c0_13 = arith.constant 0 : index
      %13 = vector.load %arg6[%c0_12, %c0_13] : memref<16x24xf32, #tpu.memory_space<vmem>>, vector<16x24xf32>
      tpu.vector_store %arg6[%c0_12, %c0_13], %12 {strides = array<i32>} : memref<16x24xf32, #tpu.memory_space<vmem>>, vector<16x24xf32>,
    } else {
    }
    return
  }
  func.func @transform_0(%arg0: i32, %arg1: i32, %arg2: i32) -> (i32, i32) {
    %c0_i32 = arith.constant 0 : i32
    return %arg0, %arg2 : i32, i32
  }
  func.func @transform_1(%arg0: i32, %arg1: i32, %arg2: i32) -> (i32, i32) {
    %c0_i32 = arith.constant 0 : i32
    return %arg2, %arg1 : i32, i32
  }
  func.func @transform_2(%arg0: i32, %arg1: i32, %arg2: i32) -> (i32, i32) {
    %c0_i32 = arith.constant 0 : i32
    %c0_i32_0 = arith.constant 0 : i32
    return %c0_i32, %arg1 : i32, i32
  }
  func.func @transform_3(%arg0: i32, %arg1: i32, %arg2: i32) -> (i32, i32) {
    %c0_i32 = arith.constant 0 : i32
    return %arg0, %arg1 : i32, i32
  }
}

</mosaic_0001>

<bundles_post_ra>
// kernel: tpu_custom_call.1
= control target key start
LH: loop header
LB: loop body
LE: loop exit
PB: predicated region body
PF: predicated region fallthrough
CT: control target
= control target key end

     0   :  { %vm23_vm0 = vcmask 195584   ;;  %s183_s0 = inlined_call_operand.vmem [shape: f32[16,32], index: 0, kind: input, shape index: {}]   ;;  %s184_s1 = inlined_call_operand.vmem [shape: f32[32,24], index: 1, kind: input, shape index: {}]   ;;  %s185_s2 = inlined_call_operand.vmem [shape: f32[1,24], index: 2, kind: input, shape index: {}]   ;;  %s186_s3 = inlined_call_operand.hbm [shape: f32[16,24], index: 3, kind: output, shape index: {}]  }
   0x1   :  { %v31_v0 = vld [vmem:[%s184_s1 + $0x18] sm:$0xff]  ;;  %v30_v1 = vld [vmem:[%s184_s1 + $0x10] sm:$0xff]  ;;  %v29_v2 = vld [vmem:[%s184_s1 + $0x8] sm:$0xff] }
   0x2   :  { %53 = vmatpush.msra.mxu0 %v31_v0  ;;  %96 = vmatpush.msra.mxu1 %v31_v0  ;;  %v103_v3 = vld [vmem:[%s185_s2] ss:$0 sm:$0xff] }
   0x3   :  { %8 = vsyncpa [#allocation4], 0  ;;  %v28_v4 = vld [vmem:[%s184_s1] sm:$0xff]  ;;  %24 = vst.msk [vmem:[#allocation2] sm:$0xff] %vm23_vm0, %v103_v3  ;;  %vm34_vm1 = vcmask 261120   ;;  %v27_v6 = vld [vmem:[%s183_s0 + $0x8] sm:$0xff] }
   0x4   :  { %54 = vmatpush.msra.mxu0 %v30_v1  ;;  %97 = vmatpush.msra.mxu1 %v30_v1  ;;  %v26_v5 = vld [vmem:[%s183_s0] sm:$0xff]  ;;  %25 = vst.msk [vmem:[#allocation2 + $0x8] sm:$0xff] %vm23_vm0, %v103_v3  ;;  %s130_s1 = smov [#allocation3]   ;;  %s82_s27 = sshll.u32 %s186_s3, 4  ;;  %s83_s27 = int_to_ptr.hbm [resolvable:$true] %s82_s27 }
   0x5   :  { %s80_s2 = sshll.u32 %s130_s1, 4  ;;  %s131_s28 = smov 128   ;;  %s81_s2 = int_to_ptr.vmem [resolvable:$true] %s80_s2 }
   0x6   :  { %55 = vmatpush.msra.mxu0 %v29_v2  ;;  %98 = vmatpush.msra.mxu1 %v29_v2  ;;  %s132_s29 = smov 8  }
   0x8   :  { %56 = vmatpush.msra.mxu0 %v28_v4  ;;  %99 = vmatpush.msra.mxu1 %v28_v4 }
   0x9   :  { %94 = vmatmul.msk.f32.vlgmr.msra.gmra.mxu0 %vm34_vm1, %v26_v5  ;;  %95 = vmatmul.msk.f32.vlgmr.msra.gmra.mxu1 %vm34_vm1, %v27_v6 }
   0xa   :  { %v32_v7 = vld [vmem:[#allocation2] sm:$0xff] }
   0xb   :  { %v33_v8 = vld [vmem:[#allocation2 + $0x8] sm:$0xff] }
  0x86   :  { %v58_v9 = vpop.f32.mrf.mxu0  ;;  %v61_v10 = vpop.f32.mrf.mxu1 }
  0x87   :  { %v64_v11 = vadd.f32 %v58_v9, %v32_v7  ;;  %v65_v12 = vadd.f32 %v61_v10, %v33_v8 }
  0x89   :  { %67 = vst.msk [vmem:[#allocation2] sm:$0xff] %vm23_vm0, %v64_v11 }
  0x8a   :  { %68 = vst.msk [vmem:[#allocation2 + $0x8] sm:$0xff] %vm23_vm0, %v65_v12 }
  0x90   :  { %v72_v13 = vld [vmem:[#allocation2] sm:$0xff] }
  0x91   :  { %v73_v14 = vld [vmem:[#allocation2 + $0x8] sm:$0xff]  ;;  %74 = vst.msk [vmem:[#allocation3] sm:$0xff] %vm23_vm0, %v72_v13 }
  0x92   :  { %75 = vst.msk [vmem:[#allocation3 + $0x8] sm:$0xff] %vm23_vm0, %v73_v14 }
  0x93   :  { %88 = dma.vmem_to_hbm [thread:$0]  %s81_s2, 256, %s83_s27, [#allocation4], %s131_s28, %s131_s28, %s132_s29  }
  0x94   :  { %128 = dma.done.wait [#allocation4], 256  }
  0x95   :  { %129 = vsyncadd [#allocation4], 4294967040 }
  0x96   :  { %93 = vsyncpa [#allocation4], 1 }

</bundles_post_ra>
